<compile_context>
chip_gen: v6e
topology: v6e:2x2x1
jax: 0.10.0
libtpu: 0.0.40
codegen_flags: <defaults>
</compile_context>

<pallas_src>
import functools

import jax
import jax.numpy as jnp
from jax import lax
from jax.experimental import pallas as pl
from jax.experimental.pallas import tpu as pltpu


_PALLAS_MIN_ELEMS = 1 << 17          # below this B*Lp, dispatch the fused XLA path


def _round_up(x: int, mult: int) -> int:
    return ((x + mult - 1) // mult) * mult


def _pick_tb(Bp: int, Lp: int) -> int:
    """Batch-tile height. Blocks are full padded rows (TL = Lp); aim for ~2 MiB
    f32 blocks, keep double-buffered in+out under ~12 MiB (v5e scoped-VMEM
    safe), and prefer >= 2 grid steps (v7x 2-TC sharding / pipelining)."""
    cap_elems = (12 << 20) // 16        # 2 bufs x (in + out) x 4 B  <= 12 MiB
    target_elems = (2 << 20) // 4       # ~2 MiB per f32 block
    divisors = [d for d in range(8, Bp + 1, 8) if Bp % d == 0]
    fitting = [d for d in divisors if d * Lp <= cap_elems] or divisors[:1]
    tb = fitting[0]
    for d in fitting:
        if d * Lp <= target_elems:
            tb = d
    if Bp // tb < 2:                    # try to give the pipeline / 2nd TC work
        smaller = [d for d in fitting if Bp // d >= 2]
        if smaller:
            good = [d for d in smaller if d * Lp * 4 >= (256 << 10)]
            tb = (good or smaller)[-1]
    return tb
    # TODO(synk): for extremely large n (Lp * 8 * 16 B > VMEM) a lane-tiled
    # variant (with an explicit neighbour-column fetch) would be required.


# ----------------------------------------------------------------------------
# Pallas kernels. rows_ref packs the four per-lane parameter rows:
#   [0]=left weights  [1]=right weights  [2]=log(denom) | 1/denom  [3]=pad fill
# Padded lanes (>= m) have lw = rw = 0, so the wrapped-around lane of the roll
# and every padded lane produce exactly 0 (log path: log(0+1) - 0).
# ----------------------------------------------------------------------------
def _dlem_lin_kernel(curr_ref, rows_ref, out_ref):
    lw = rows_ref[0:1, :]
    rw = rows_ref[1:2, :]
    inv_denom = rows_ref[2:3, :]
    x = curr_ref[...]
    x_next = pltpu.roll(x, shift=x.shape[-1] - 1, axis=1)   # lane j <- lane j+1
    out_ref[...] = (x_next * rw + x * lw) * inv_denom


def _make_log_kernel(b_valid: int, tb: int, need_mask: bool):
    def kernel(curr_ref, rows_ref, out_ref, psum_ref):
        lw = rows_ref[0:1, :]
        rw = rows_ref[1:2, :]
        log_denom = rows_ref[2:3, :]
        pad_fill = rows_ref[3:4, :]
        x = curr_ref[...]
        x_next = pltpu.roll(x, shift=x.shape[-1] - 1, axis=1)
        out = jnp.log(x_next * rw + x * lw + pad_fill) - log_denom
        out_ref[...] = out
        # Per-tile partial sum for the global mean.  Padded lanes are exact 0;
        # padded batch sublanes (rows >= true B) are masked out here.
        if need_mask:
            rid = lax.broadcasted_iota(jnp.int32, out.shape, 0) + pl.program_id(0) * tb
            s = jnp.sum(jnp.where(rid < b_valid, out, 0.0))
        else:
            s = jnp.sum(out)
        ii = lax.broadcasted_iota(jnp.int32, psum_ref.shape, 1)
        jj = lax.broadcasted_iota(jnp.int32, psum_ref.shape, 2)
        psum_ref[...] = jnp.where((ii == 0) & (jj == 0), s, 0.0)
    return kernel


# ----------------------------------------------------------------------------
# Fixed-shape jitted core: curr padded to (B, Lp), index_diag traced int32.
# ----------------------------------------------------------------------------
@functools.partial(jax.jit, static_argnames=("transform", "use_pallas"))
def _dlem_core(curr_pad, index_diag, left, right, w1, b1, w2, b2, const,
               *, transform: bool, use_pallas: bool):
    f32 = jnp.float32
    B, Lp = curr_pad.shape
    n = left.shape[0]

    curr_pad = curr_pad.astype(f32)
    left = left.astype(f32)
    right = right.astype(f32)
    w1 = w1.astype(f32)
    b1 = b1.astype(f32)
    w2 = w2.astype(f32)
    b2 = b2.astype(f32)
    const = const.astype(f32)

    idx = index_diag.astype(jnp.int32)
    m = jnp.int32(n - 1) - idx                              # valid output length
    lane = jnp.arange(Lp, dtype=jnp.int32)
    valid = lane < m

    # ---- parameter-only (1, Lp) work, hoisted out of the kernel -------------
    zpad = jnp.zeros((Lp,), f32)
    left_ext = jnp.concatenate([left, zpad])
    right_ext = jnp.concatenate([right, zpad])

    def dslice(vec, start):
        return lax.dynamic_slice(vec, (start,), (Lp,))

    rw = jnp.where(valid, dslice(right_ext, 1), 0.0)        # right[1 + j]
    lw = jnp.where(valid, dslice(left_ext, idx), 0.0)       # left[idx + j]
    r_out = dslice(right_ext, 0)                            # right[j]
    l_out = dslice(left_ext, idx + 1)                       # left[idx + 1 + j]
    r_stall = dslice(right_ext, idx + 1)                    # right[idx + 1 + j]
    l_stall = dslice(left_ext, 0)                           # left[j]

    # Stalling MLP 2 -> 10 -> 1 (broadcast elementwise; no matmul needed).
    h = jnp.tanh(w1[:, 0:1] * r_stall[None, :]
                 + w1[:, 1:2] * l_stall[None, :]
                 + b1[:, None])                             # (10, Lp)
    stall = jax.nn.sigmoid(jnp.sum(h * jnp.reshape(w2, (10, 1)), axis=0)
                           + jnp.reshape(b2, ()))           # (Lp,)
    denom = jnp.where(valid, r_out + l_out + const * stall, 1.0)

    if transform:
        den_row = jnp.log(denom)                            # == 0 on padded lanes
        pad_fill = jnp.where(valid, 0.0, 1.0)
    else:
        den_row = jnp.where(valid, 1.0 / denom, 0.0)        # exact reciprocal
        pad_fill = zpad

    total = jnp.float32(0.0)

    if not use_pallas:
        # Fused XLA path for small diagonals (launch / padding overhead wins).
        x_next = jnp.roll(curr_pad, -1, axis=1)             # wrap lane killed by rw==0
        mass_in = x_next * rw[None, :] + curr_pad * lw[None, :]
        if transform:
            out = jnp.log(mass_in + pad_fill[None, :]) - den_row[None, :]
            total = jnp.sum(out)                            # padded lanes are exact 0
        else:
            out = mass_in * den_row[None, :]
    else:
        rows = jnp.stack([lw, rw, den_row, pad_fill,
                          zpad, zpad, zpad, zpad], axis=0)  # (8, Lp), tile aligned

        Bp = _round_up(max(B, 1), 8)
        curr_a = curr_pad
        if Bp != B:
            # Finite filler; these rows are masked out of the partial sums and
            # sliced off the output.
            curr_a = jnp.concatenate([curr_a, jnp.ones((Bp - B, Lp), f32)], axis=0)

        TB = _pick_tb(Bp, Lp)
        G = Bp // TB
        blk = pl.BlockSpec((TB, Lp), lambda i: (i, 0))
        row_spec = pl.BlockSpec((8, Lp), lambda i: (0, 0))  # constant -> stays resident
        cparams = pltpu.CompilerParams(dimension_semantics=("parallel",),
                                       vmem_limit_bytes=32 << 20)

        if transform:
            kernel = _make_log_kernel(B, TB, Bp != B)
            out_pad, psum = pl.pallas_call(
                kernel,
                out_shape=(jax.ShapeDtypeStruct((Bp, Lp), f32),
                           jax.ShapeDtypeStruct((G, 8, 128), f32)),
                grid=(G,),
                in_specs=[blk, row_spec],
                out_specs=(blk, pl.BlockSpec((1, 8, 128), lambda i: (i, 0, 0))),
                compiler_params=cparams,
            )(curr_a, rows)
            out = out_pad[:B]
            total = jnp.sum(psum)                           # tiny (G x 1024) array
        else:
            out_pad = pl.pallas_call(
                _dlem_lin_kernel,
                out_shape=jax.ShapeDtypeStruct((Bp, Lp), f32),
                grid=(G,),
                in_specs=[blk, row_spec],
                out_specs=blk,
                compiler_params=cparams,
            )(curr_a, rows)
            out = out_pad[:B]

    if transform:
        count = (B * jnp.maximum(m, 1)).astype(f32)         # guard degenerate m == 0
        mean = jnp.where(m > 0, total / count, 0.0)
        out = jnp.where(valid[None, :], out - mean, 0.0)
    return out                                              # (B, Lp); [:, :m] valid


# ----------------------------------------------------------------------------
# Public API.
# ----------------------------------------------------------------------------
def dlem_forward_padded(curr_pad, params, index_diag, transform: bool = True,
                        use_pallas=None):
    """Padded-in / padded-out DLEM.forward.

    curr_pad: (B, Lp) with the diagonal in [:, :n-index_diag] and zeros beyond.
    Returns (B, Lp) with the next diagonal in [:, :n-index_diag-1] and zeros
    beyond — directly reusable as the padded input of diagonal index_diag + 1
    (transform=False), avoiding per-diagonal unpad/re-pad HBM passes.
    """
    B, Lp = curr_pad.shape
    if use_pallas is None:
        use_pallas = (B * Lp) >= _PALLAS_MIN_ELEMS
    return _dlem_core(curr_pad, jnp.asarray(index_diag, jnp.int32),
                      params["left"], params["right"], params["w1"], params["b1"],
                      params["w2"], params["b2"], params["const"],
                      transform=transform, use_pallas=bool(use_pallas))


def _pad_curr(curr_diag, n: int):
    B, L = curr_diag.shape
    Lp = _round_up(n, 128)
    return jnp.zeros((B, Lp), jnp.float32).at[:, :L].set(curr_diag.astype(jnp.float32))


def dlem_forward(curr_diag, params, index_diag: int, transform: bool = True,
                 use_pallas=None):
    """Convenience wrapper matching DLEM.forward (unpadded in / unpadded out)."""
    n = int(params["left"].shape[0])
    B, L = curr_diag.shape
    assert L == n - index_diag
    out_pad = dlem_forward_padded(_pad_curr(curr_diag, n), params, index_diag,
                                  transform=transform, use_pallas=use_pallas)
    return out_pad[:, :L - 1]


# ----------------------------------------------------------------------------
# Pure-JAX reference (mirrors the PyTorch forward) for verification.
# ----------------------------------------------------------------------------
def dlem_forward_ref(curr_diag, params, index_diag: int, transform: bool = True):
    n = params["left"].shape[0]
    L = curr_diag.shape[1]
    m = L - 1
    left, right = params["left"], params["right"]
    mass_in = (curr_diag[:, 1:L] * right[1:L]
               + curr_diag[:, 0:m] * left[index_diag:index_diag + m])
    mass_out = right[0:m] + left[index_diag + 1:n]
    feat = jnp.stack([right[index_diag + 1:n], left[0:m]], axis=1)   # (m, 2)
    h = jnp.tanh(feat @ params["w1"].T + params["b1"])               # (m, 10)
    stall = jax.nn.sigmoid(h @ params["w2"].T + params["b2"]).reshape(-1)
    mass_out = mass_out + params["const"] * stall
    pred = mass_in / mass_out
    if transform:
        pred = jnp.log(pred)
        pred = pred - jnp.mean(pred)
    return pred


def _make_params(key, n: int):
    k0, k1, k2, k3, k4, k5 = jax.random.split(key, 6)
    return {
        "const": jnp.asarray(1.0, jnp.float32),
        "left": jnp.ones((n,), jnp.float32) * 0.95
                + 0.02 * jax.random.normal(k0, (n,), jnp.float32),
        "right": jnp.ones((n,), jnp.float32) * 0.95
                 + 0.02 * jax.random.normal(k1, (n,), jnp.float32),
        # stalling MLP: Linear(2,10) -> Tanh -> Linear(10,1) -> Sigmoid
        "w1": jax.random.uniform(k2, (10, 2), jnp.float32, -0.7, 0.7),
        "b1": jax.random.uniform(k3, (10,), jnp.float32, -0.7, 0.7),
        "w2": jax.random.uniform(k4, (1, 10), jnp.float32, -0.3, 0.3),
        "b2": jax.random.uniform(k5, (1,), jnp.float32, -0.3, 0.3),
    }
    # NOTE: `unload` exists in the module but is unused in forward(); omitted.


if __name__ == "__main__":
    key = jax.random.PRNGKey(0)
    kp, kd = jax.random.split(key)

    # --- small shapes (module-scale): force the Pallas path and check it -----
    n, B = 16, 2
    params = _make_params(kp, n)
    for index_diag in (2, 4, 7):
        kc = jax.random.fold_in(kd, index_diag)
        curr = jax.random.uniform(kc, (B, n - index_diag), jnp.float32, 0.5, 1.5)

        out = jax.block_until_ready(
            dlem_forward(curr, params, index_diag, transform=True, use_pallas=True))
        ref = dlem_forward_ref(curr, params, index_diag, transform=True)
        assert out.shape == (B, n - index_diag - 1)
        assert jnp.allclose(out, ref, atol=2e-5, rtol=2e-5), ("log", index_diag)

        out_lin = jax.block_until_ready(
            dlem_forward(curr, params, index_diag, transform=False, use_pallas=True))
        ref_lin = dlem_forward_ref(curr, params, index_diag, transform=False)
        assert jnp.allclose(out_lin, ref_lin, atol=2e-5, rtol=2e-5), ("lin", index_diag)

    # Auto-dispatch at this size takes the fused XLA path; check it too.
    out_small = jax.block_until_ready(dlem_forward(curr, params, 7, transform=True))
    assert jnp.allclose(out_small, dlem_forward_ref(curr, params, 7, True),
                        atol=2e-5, rtol=2e-5)

    # --- moderate shapes: auto-dispatch hits the Pallas kernel, bigger tiles -
    n2, B2 = 1024, 128
    params2 = _make_params(jax.random.fold_in(kp, 1), n2)
    d0 = 3
    curr2 = jax.random.uniform(jax.random.fold_in(kd, 99),
                               (B2, n2 - d0), jnp.float32, 0.5, 1.5)
    out2 = jax.block_until_ready(dlem_forward(curr2, params2, d0, transform=True))
    ref2 = dlem_forward_ref(curr2, params2, d0, transform=True)
    assert jnp.allclose(out2, ref2, atol=5e-5, rtol=5e-5)

    # --- padded-in / padded-out chaining (contact-map style propagation) -----
    chain_pad = _pad_curr(curr2, n2)
    chain_ref = curr2
    for d in (d0, d0 + 1, d0 + 2):
        chain_pad = dlem_forward_padded(chain_pad, params2, d, transform=False)
        chain_ref = dlem_forward_ref(chain_ref, params2, d, transform=False)
    chain_pad = jax.block_until_ready(chain_pad)
    m_last = n2 - (d0 + 2) - 1
    assert jnp.allclose(chain_pad[:, :m_last], chain_ref, atol=5e-5, rtol=5e-5)
    assert jnp.all(chain_pad[:, m_last:] == 0.0)      # padding stays exact zeros

    print("KERNEL_OK")
</pallas_src>

<mosaic_0001>
module attributes {stable_mosaic.version = 11 : i64} {
  func.func @kernel(%arg0: i32, %arg1: memref<8x128xf32, #tpu.memory_space<vmem>>, %arg2: memref<8x128xf32, #tpu.memory_space<vmem>>, %arg3: memref<8x128xf32, #tpu.memory_space<vmem>>, %arg4: memref<1x8x128xf32, #tpu.memory_space<vmem>>) attributes {dimension_semantics = [#tpu.dimension_semantics<parallel>], iteration_bounds = array<i64: 1>, scalar_prefetch = 0 : i64, scratch_operands = 0 : i64, tpu.core_type = #tpu.core_type<tc>, window_params = [{transform_indices = @transform_0, window_bounds = array<i64: 8, 128>}, {pipeline_mode = #tpu.pipeline_mode<synchronous>, transform_indices = @transform_1, window_bounds = array<i64: 8, 128>}, {transform_indices = @transform_2, window_bounds = array<i64: 8, 128>}, {transform_indices = @transform_3, window_bounds = array<i64: 1, 8, 128>}]} {
    %c0 = arith.constant 0 : index
    %c0_0 = arith.constant 0 : index
    %0 = vector.load %arg2[%c0, %c0_0] : memref<8x128xf32, #tpu.memory_space<vmem>>, vector<1x128xf32>
    %c1 = arith.constant 1 : index
    %c0_1 = arith.constant 0 : index
    %1 = vector.load %arg2[%c1, %c0_1] : memref<8x128xf32, #tpu.memory_space<vmem>>, vector<1x128xf32>
    %c2 = arith.constant 2 : index
    %c0_2 = arith.constant 0 : index
    %2 = vector.load %arg2[%c2, %c0_2] : memref<8x128xf32, #tpu.memory_space<vmem>>, vector<1x128xf32>
    %c3 = arith.constant 3 : index
    %c0_3 = arith.constant 0 : index
    %3 = vector.load %arg2[%c3, %c0_3] : memref<8x128xf32, #tpu.memory_space<vmem>>, vector<1x128xf32>
    %c0_4 = arith.constant 0 : index
    %c0_5 = arith.constant 0 : index
    %4 = vector.load %arg1[%c0_4, %c0_5] : memref<8x128xf32, #tpu.memory_space<vmem>>, vector<8x128xf32>
    %c127_i32 = arith.constant 127 : i32
    %5 = tpu.dynamic_rotate %4 by %c127_i32 dim 1 : vector<8x128xf32>, i32 -> vector<8x128xf32>
    %6 = vector.broadcast %1 : vector<1x128xf32> to vector<8x128xf32>
    %7 = arith.mulf %5, %6 : vector<8x128xf32>
    %8 = vector.broadcast %0 : vector<1x128xf32> to vector<8x128xf32>
    %9 = arith.mulf %4, %8 : vector<8x128xf32>
    %10 = arith.addf %7, %9 : vector<8x128xf32>
    %11 = vector.broadcast %3 : vector<1x128xf32> to vector<8x128xf32>
    %12 = arith.addf %10, %11 : vector<8x128xf32>
    %13 = math.log %12 : vector<8x128xf32>
    %14 = vector.broadcast %2 : vector<1x128xf32> to vector<8x128xf32>
    %15 = arith.subf %13, %14 : vector<8x128xf32>
    %c0_6 = arith.constant 0 : index
    %c0_7 = arith.constant 0 : index
    %16 = vector.load %arg3[%c0_6, %c0_7] : memref<8x128xf32, #tpu.memory_space<vmem>>, vector<8x128xf32>
    tpu.vector_store %arg3[%c0_6, %c0_7], %15 {strides = array<i32>} : memref<8x128xf32, #tpu.memory_space<vmem>>, vector<8x128xf32>,
    %17 = tpu.iota {dimensions = array<i32: 0>} : vector<8x128xi32>
    %c8_i32 = arith.constant 8 : i32
    %18 = arith.muli %arg0, %c8_i32 : i32
    %19 = vector.broadcast %18 : i32 to vector<8x128xi32>
    %20 = arith.addi %17, %19 : vector<8x128xi32>
    %c2_i32 = arith.constant 2 : i32
    %21 = vector.broadcast %c2_i32 : i32 to vector<8x128xi32>
    %22 = arith.cmpi slt, %20, %21 : vector<8x128xi32>
    %cst = arith.constant 0.000000e+00 : f32
    %23 = vector.broadcast %cst : f32 to vector<8x128xf32>
    %24 = arith.select %22, %15, %23 : vector<8x128xi1>, vector<8x128xf32>
    %25 = vector.shape_cast %24 : vector<8x128xf32> to vector<1x8x128xf32>
    %cst_8 = arith.constant dense<0.000000e+00> : vector<1xf32>
    %26 = vector.multi_reduction <add>, %25, %cst_8 [1, 2] : vector<1x8x128xf32> to vector<1xf32>
    %27 = vector.shape_cast %26 : vector<1xf32> to vector<1x1x1xf32>
    %28 = vector.extract %27[0, 0, 0] : f32 from vector<1x1x1xf32>
    %29 = tpu.iota {dimensions = array<i32: 1>} : vector<1x8x128xi32>
    %30 = tpu.iota {dimensions = array<i32: 2>} : vector<1x8x128xi32>
    %c0_i32 = arith.constant 0 : i32
    %31 = vector.broadcast %c0_i32 : i32 to vector<1x8x128xi32>
    %32 = arith.cmpi eq, %29, %31 : vector<1x8x128xi32>
    %c0_i32_9 = arith.constant 0 : i32
    %33 = vector.broadcast %c0_i32_9 : i32 to vector<1x8x128xi32>
    %34 = arith.cmpi eq, %30, %33 : vector<1x8x128xi32>
    %35 = arith.andi %32, %34 : vector<1x8x128xi1>
    %cst_10 = arith.constant 0.000000e+00 : f32
    %36 = vector.broadcast %28 : f32 to vector<1x8x128xf32>
    %37 = vector.broadcast %cst_10 : f32 to vector<1x8x128xf32>
    %38 = arith.select %35, %36, %37 : vector<1x8x128xi1>, vector<1x8x128xf32>
    %c0_11 = arith.constant 0 : index
    %c0_12 = arith.constant 0 : index
    %c0_13 = arith.constant 0 : index
    %39 = vector.load %arg4[%c0_11, %c0_12, %c0_13] : memref<1x8x128xf32, #tpu.memory_space<vmem>>, vector<1x8x128xf32>
    tpu.vector_store %arg4[%c0_11, %c0_12, %c0_13], %38 {strides = array<i32>} : memref<1x8x128xf32, #tpu.memory_space<vmem>>, vector<1x8x128xf32>,
    return
  }
  func.func @transform_0(%arg0: i32) -> (i32, i32) {
    %c0_i32 = arith.constant 0 : i32
    %c0_i32_0 = arith.constant 0 : i32
    return %arg0, %c0_i32 : i32, i32
  }
  func.func @transform_1(%arg0: i32) -> (i32, i32) {
    %c0_i32 = arith.constant 0 : i32
    %c0_i32_0 = arith.constant 0 : i32
    %c0_i32_1 = arith.constant 0 : i32
    return %c0_i32, %c0_i32_0 : i32, i32
  }
  func.func @transform_2(%arg0: i32) -> (i32, i32) {
    %c0_i32 = arith.constant 0 : i32
    %c0_i32_0 = arith.constant 0 : i32
    return %arg0, %c0_i32 : i32, i32
  }
  func.func @transform_3(%arg0: i32) -> (i32, i32, i32) {
    %c0_i32 = arith.constant 0 : i32
    %c0_i32_0 = arith.constant 0 : i32
    %c0_i32_1 = arith.constant 0 : i32
    return %arg0, %c0_i32, %c0_i32_0 : i32, i32, i32
  }
}

</mosaic_0001>

<bundles_post_ra>
// kernel: _dlem_core.1
= control target key start
LH: loop header
LB: loop body
LE: loop exit
PB: predicated region body
PF: predicated region fallthrough
CT: control target
= control target key end

     0   :  { %s85_s14 = smov 127   ;;  %v44_v9 = vlaneseq  ;;  %s127_s0 = inlined_call_operand.vmem [shape: f32[8,128], index: 0, kind: input, shape index: {}]   ;;  %s128_s1 = inlined_call_operand.vmem [shape: f32[8,128], index: 1, kind: input, shape index: {}]   ;;  %s129_s2 = inlined_call_operand.vmem [shape: f32[8,128], index: 2, kind: output, shape index: {0}]   ;;  %s130_s3 = inlined_call_operand.vmem [shape: f32[1,8,128], index: 3, kind: output, shape index: {1}]  }
   0x1   :  { %v17_v0 = vld [vmem:[%s127_s0] sm:$0xff] }
   0x2   :  { %18 = vrot.lane.b32.xlu0 %v17_v0, %s85_s14  ;;  %v77_v1 = vld [vmem:[%s128_s1] ss:$0 sm:$0xff]  ;;  %v76_v2 = vld [vmem:[%s128_s1 + $0x1] ss:$0 sm:$0xff]  ;;  %v78_v6 = vld [vmem:[%s128_s1 + $0x3] ss:$0 sm:$0xff] }
   0x3   :  { %v29_v3 = vmul.f32 %v77_v1, %v17_v0  ;;  %v45_v10 = vshrl.u32 %v44_v9, 7  ;;  %v79_v12 = vld [vmem:[%s128_s1 + $0x2] ss:$0 sm:$0xff]  ;;  %v61_v23 = vand.u32 127, %v44_v9 }
   0x5   :  { %vm49_vm0 = vcmp.lt.s32.totalorder %v45_v10, 2  ;;  %vm62_vm1 = vcmp.eq.s32.totalorder %v45_v10, 0  ;;  %vm63_vm2 = vcmp.eq.s32.totalorder %v61_v23, 0 }
   0x6   :  { %vm64_vm3 = vmand %vm62_vm1, %vm63_vm2 }
  0x74   :  { %v19_v4 = vpop.permute.xlu0 %18 }
  0x75   :  { %v24_v5 = vmul.f32 %v76_v2, %v19_v4 }
  0x77   :  { %v30_v7 = vadd.f32 %v29_v3, %v24_v5 }
  0x79   :  { %v35_v8 = vadd.f32 %v78_v6, %v30_v7 }
  0x7b   :  { %83 = vlog2.f32 %v35_v8 }
  0x88   :  { %v84_v11 = vpop.eup %83 }
  0x89   :  { %v37_v13 = vmul.f32 0.6931472, %v84_v11 }
  0x8b   :  { %v42_v14 = vsub.f32 %v37_v13, %v79_v12 }
  0x8d   :  { %v50_v15 = vsel %vm49_vm0, %v42_v14, 0.0  ;;  %43 = vst [vmem:[%s129_s2] sm:$0xff] %v42_v14 }
  0x8e   :  { %51 = vadd.xlane.f32.xlu0 %v50_v15 }
 0x117   :  { %v52_v16 = vpop.xlane.xlu0 %51 }
 0x118   :  { %v53_v17 = vrot.slane %v52_v16, 4 }
 0x11a   :  { %v54_v18 = vadd.f32 %v53_v17, %v52_v16 }
 0x11c   :  { %v55_v19 = vrot.slane %v54_v18, 2 }
 0x11e   :  { %v56_v20 = vadd.f32 %v55_v19, %v54_v18 }
 0x120   :  { %v57_v21 = vrot.slane %v56_v20, 1 }
 0x122   :  { %v58_v22 = vadd.f32 %v57_v21, %v56_v20 }
 0x124   :  { %80 = vpush %v58_v22 }
 0x155   :  { %s81_s1 = spop %80 }
 0x156   :  { %v65_v24 = vstv %s81_s1 }
 0x157   :  { %v66_v25 = vsel %vm64_vm3, %v65_v24, 0.0 }
 0x158   :  { %67 = vst [vmem:[%s130_s3] sm:$0xff] %v66_v25 }

</bundles_post_ra>
